<compile_context>
chip_gen: v6e
topology: v6e:2x2x1
jax: 0.10.0
libtpu: 0.0.40
codegen_flags: <defaults>
</compile_context>

<pallas_src>
import functools

import jax
import jax.numpy as jnp
from jax.experimental import pallas as pl
from jax.experimental.pallas import tpu as pltpu

H1, H2, H3 = 256, 128, 64     # hidden sizes from the PyTorch module
LANES = 128
BF16_SUBLANES = 16            # bf16 packs 16 rows per (sublane, lane) vreg tile


def _round_up(x, m):
    return (x + m - 1) // m * m


# ----------------------------- Pallas kernel --------------------------------

def ram_dqn_kernel(x_ref, w1_ref, b1_ref, w2_ref, b2_ref, w3_ref, b3_ref,
                   w4_ref, b4_ref, o_ref):
    """Fused 4-layer MLP on one (TM, K) bf16 batch tile. f32 accumulation."""

    def dense(h_bf16, w_ref, b_ref, relu):
        y = jnp.dot(h_bf16, w_ref[...],
                    preferred_element_type=jnp.float32) + b_ref[...]
        return jnp.maximum(y, 0.0) if relu else y

    h = dense(x_ref[...], w1_ref, b1_ref, relu=True)            # x already bf16
    h = dense(h.astype(jnp.bfloat16), w2_ref, b2_ref, relu=True)
    h = dense(h.astype(jnp.bfloat16), w3_ref, b3_ref, relu=True)
    o_ref[...] = dense(h.astype(jnp.bfloat16), w4_ref, b4_ref, relu=False)


# ------------------------------ Parameters -----------------------------------

def init_params(key, n_state, n_actions):
    """PyTorch-default-style init: U(-1/sqrt(fan_in), 1/sqrt(fan_in)).

    Weights are stored PyTorch-style as [out_features, in_features]."""
    dims = [(n_state, H1), (H1, H2), (H2, H3), (H3, n_actions)]
    keys = jax.random.split(key, 2 * len(dims))
    params = {}
    for idx, (fan_in, fan_out) in enumerate(dims):
        bound = 1.0 / float(fan_in) ** 0.5
        params[f"w{idx + 1}"] = jax.random.uniform(
            keys[2 * idx], (fan_out, fan_in), jnp.float32, -bound, bound)
        params[f"b{idx + 1}"] = jax.random.uniform(
            keys[2 * idx + 1], (fan_out,), jnp.float32, -bound, bound)
    return params


def prepare_params(params, n_state, n_actions):
    """One-time prep: transpose to [in, out], pad n_state to 128 lanes, pad the
    final output width only to a multiple of 8 (narrow masked store, tiny
    writeback), zero-pad H3 64->128 (exact; lane-dense on 256-wide MXUs), and
    cast weights to bf16 (biases stay f32)."""
    k_pad = _round_up(n_state, LANES)
    n_out = _round_up(n_actions, 8)
    h3p = LANES  # 64 -> 128

    w1 = jnp.pad(params["w1"].T, ((0, k_pad - n_state), (0, 0)))       # [k_pad, H1]
    w3 = jnp.pad(params["w3"].T, ((0, 0), (0, h3p - H3)))              # [H2, 128]
    b3 = jnp.pad(params["b3"], (0, h3p - H3))
    w4 = jnp.pad(params["w4"].T,
                 ((0, h3p - H3), (0, n_out - n_actions)))              # [128, n_out]
    b4 = jnp.pad(params["b4"], (0, n_out - n_actions))

    return {
        "w1": w1.astype(jnp.bfloat16),
        "w2": params["w2"].T.astype(jnp.bfloat16),   # [H1, H2]
        "w3": w3.astype(jnp.bfloat16),               # [H2, 128]
        "w4": w4.astype(jnp.bfloat16),               # [128, n_out]
        "b1": params["b1"].reshape(1, H1),
        "b2": params["b2"].reshape(1, H2),
        "b3": b3.reshape(1, h3p),
        "b4": b4.reshape(1, n_out),
    }


# ------------------------------ Forward pass ---------------------------------

@functools.partial(jax.jit, static_argnames=("n_actions", "block_m"))
def ram_dqn_forward(prep, x, *, n_actions, block_m=2048):
    """x: [B, n_state] float -> q: [B, n_actions] f32."""
    B, n_state = x.shape
    k_pad = prep["w1"].shape[0]
    n_out = prep["w4"].shape[1]
    h3p = prep["w3"].shape[1]

    # bf16 input: halves the dominant HBM read. Cast + (rare) K-pad + the
    # <=15-row round-up below all fuse into a single XLA pass over x.
    x = x.astype(jnp.bfloat16)
    if n_state != k_pad:
        x = jnp.pad(x, ((0, 0), (0, k_pad - n_state)))

    # Rows: round up only to the 16-row bf16 tile. No padding to the block
    # size — the cdiv grid's partial last block is masked by Pallas.
    m = _round_up(B, BF16_SUBLANES)
    if m != B:
        x = jnp.pad(x, ((0, m - B), (0, 0)))

    tm = min(block_m, m)
    if m <= block_m and tm >= 1024:
        # Split a single big tile into two grid steps so ("parallel",) can
        # shard the batch across the two TensorCores on v7x (megacore).
        tm = _round_up((m + 1) // 2, BF16_SUBLANES)
    grid_m = pl.cdiv(m, tm)

    def fixed(shape):
        nd = len(shape)
        return pl.BlockSpec(shape, lambda i, _nd=nd: (0,) * _nd)

    flops = 2 * m * (k_pad * H1 + H1 * H2 + H2 * h3p + h3p * n_out)
    bytes_accessed = (
        m * k_pad * 2 + m * n_out * 4                               # bf16 x, f32 out
        + sum(int(prep[f"w{i}"].size) * 2 for i in (1, 2, 3, 4))    # bf16 weights
        + sum(int(prep[f"b{i}"].size) * 4 for i in (1, 2, 3, 4)))   # f32 biases

    out = pl.pallas_call(
        ram_dqn_kernel,
        out_shape=jax.ShapeDtypeStruct((m, n_out), jnp.float32),
        grid=(grid_m,),
        in_specs=[
            pl.BlockSpec((tm, k_pad), lambda i: (i, 0)),
            fixed(prep["w1"].shape), fixed(prep["b1"].shape),
            fixed(prep["w2"].shape), fixed(prep["b2"].shape),
            fixed(prep["w3"].shape), fixed(prep["b3"].shape),
            fixed(prep["w4"].shape), fixed(prep["b4"].shape),
        ],
        out_specs=pl.BlockSpec((tm, n_out), lambda i: (i, 0)),
        compiler_params=pltpu.CompilerParams(
            dimension_semantics=("parallel",)),
        cost_estimate=pl.CostEstimate(
            flops=flops, transcendentals=0, bytes_accessed=bytes_accessed),
    )(x, prep["w1"], prep["b1"], prep["w2"], prep["b2"],
      prep["w3"], prep["b3"], prep["w4"], prep["b4"])

    return out[:B, :n_actions]


def ram_dqn_reference(params, x):
    """Pure-JAX f32 reference (mirrors the PyTorch forward)."""
    h = x
    for idx in range(1, 4):
        h = jnp.maximum(h @ params[f"w{idx}"].T + params[f"b{idx}"], 0.0)
    return h @ params["w4"].T + params["b4"]


if __name__ == "__main__":
    key = jax.random.PRNGKey(0)
    pkey, xkey, xkey_tiny = jax.random.split(key, 3)

    n_state, n_actions = 128, 6
    params = init_params(pkey, n_state, n_actions)
    prep = prepare_params(params, n_state, n_actions)

    # One 16-aligned batch and one tiny/ragged batch (exercises the row
    # round-up + output slice path).
    for bkey, batch in ((xkey, 32), (xkey_tiny, 4)):
        x = jax.random.uniform(bkey, (batch, n_state), jnp.float32)
        q = jax.block_until_ready(ram_dqn_forward(prep, x, n_actions=n_actions))
        assert q.shape == (batch, n_actions) and q.dtype == jnp.float32
        assert bool(jnp.all(jnp.isfinite(q)))
        ref = ram_dqn_reference(params, x)
        err = float(jnp.max(jnp.abs(q - ref)))
        assert err < 5e-2, f"batch={batch}: max abs error {err}"

    print("KERNEL_OK")
</pallas_src>

<mosaic_0001>
module attributes {stable_mosaic.version = 11 : i64} {
  func.func @ram_dqn_kernel(%arg0: i32, %arg1: memref<32x128xbf16, #tpu.memory_space<vmem>>, %arg2: memref<128x256xbf16, #tpu.memory_space<vmem>>, %arg3: memref<1x256xf32, #tpu.memory_space<vmem>>, %arg4: memref<256x128xbf16, #tpu.memory_space<vmem>>, %arg5: memref<1x128xf32, #tpu.memory_space<vmem>>, %arg6: memref<128x128xbf16, #tpu.memory_space<vmem>>, %arg7: memref<1x128xf32, #tpu.memory_space<vmem>>, %arg8: memref<128x8xbf16, #tpu.memory_space<vmem>>, %arg9: memref<1x8xf32, #tpu.memory_space<vmem>>, %arg10: memref<32x8xf32, #tpu.memory_space<vmem>>) attributes {dimension_semantics = [#tpu.dimension_semantics<parallel>], iteration_bounds = array<i64: 1>, scalar_prefetch = 0 : i64, scratch_operands = 0 : i64, tpu.core_type = #tpu.core_type<tc>, window_params = [{transform_indices = @transform_0, window_bounds = array<i64: 32, 128>}, {pipeline_mode = #tpu.pipeline_mode<synchronous>, transform_indices = @transform_1, window_bounds = array<i64: 128, 256>}, {pipeline_mode = #tpu.pipeline_mode<synchronous>, transform_indices = @transform_2, window_bounds = array<i64: 1, 256>}, {pipeline_mode = #tpu.pipeline_mode<synchronous>, transform_indices = @transform_3, window_bounds = array<i64: 256, 128>}, {pipeline_mode = #tpu.pipeline_mode<synchronous>, transform_indices = @transform_4, window_bounds = array<i64: 1, 128>}, {pipeline_mode = #tpu.pipeline_mode<synchronous>, transform_indices = @transform_5, window_bounds = array<i64: 128, 128>}, {pipeline_mode = #tpu.pipeline_mode<synchronous>, transform_indices = @transform_6, window_bounds = array<i64: 1, 128>}, {pipeline_mode = #tpu.pipeline_mode<synchronous>, transform_indices = @transform_7, window_bounds = array<i64: 128, 8>}, {pipeline_mode = #tpu.pipeline_mode<synchronous>, transform_indices = @transform_8, window_bounds = array<i64: 1, 8>}, {transform_indices = @transform_9, window_bounds = array<i64: 32, 8>}]} {
    %c0 = arith.constant 0 : index
    %c0_0 = arith.constant 0 : index
    %0 = vector.load %arg1[%c0, %c0_0] : memref<32x128xbf16, #tpu.memory_space<vmem>>, vector<32x128xbf16>
    %c0_1 = arith.constant 0 : index
    %c0_2 = arith.constant 0 : index
    %1 = vector.load %arg2[%c0_1, %c0_2] : memref<128x256xbf16, #tpu.memory_space<vmem>>, vector<128x256xbf16>
    %cst = arith.constant dense<0.000000e+00> : vector<32x256xf32>
    %2 = tpu.matmul %0, %1, %cst {dimension_numbers = #tpu.dot_dimension_numbers<[1], [0], [0], [1], [0, 0, 1, 1], [], []>} : vector<32x128xbf16>, vector<128x256xbf16>, vector<32x256xf32> -> vector<32x256xf32>
    %c0_3 = arith.constant 0 : index
    %c0_4 = arith.constant 0 : index
    %3 = vector.load %arg3[%c0_3, %c0_4] : memref<1x256xf32, #tpu.memory_space<vmem>>, vector<1x256xf32>
    %4 = vector.broadcast %3 : vector<1x256xf32> to vector<32x256xf32>
    %5 = arith.addf %2, %4 : vector<32x256xf32>
    %cst_5 = arith.constant 0.000000e+00 : f32
    %6 = vector.broadcast %cst_5 : f32 to vector<32x256xf32>
    %7 = arith.maximumf %5, %6 : vector<32x256xf32>
    %8 = arith.truncf %7 : vector<32x256xf32> to vector<32x256xbf16>
    %c0_6 = arith.constant 0 : index
    %c0_7 = arith.constant 0 : index
    %9 = vector.load %arg4[%c0_6, %c0_7] : memref<256x128xbf16, #tpu.memory_space<vmem>>, vector<256x128xbf16>
    %cst_8 = arith.constant dense<0.000000e+00> : vector<32x128xf32>
    %10 = tpu.matmul %8, %9, %cst_8 {dimension_numbers = #tpu.dot_dimension_numbers<[1], [0], [0], [1], [0, 0, 1, 1], [], []>} : vector<32x256xbf16>, vector<256x128xbf16>, vector<32x128xf32> -> vector<32x128xf32>
    %c0_9 = arith.constant 0 : index
    %c0_10 = arith.constant 0 : index
    %11 = vector.load %arg5[%c0_9, %c0_10] : memref<1x128xf32, #tpu.memory_space<vmem>>, vector<1x128xf32>
    %12 = vector.broadcast %11 : vector<1x128xf32> to vector<32x128xf32>
    %13 = arith.addf %10, %12 : vector<32x128xf32>
    %cst_11 = arith.constant 0.000000e+00 : f32
    %14 = vector.broadcast %cst_11 : f32 to vector<32x128xf32>
    %15 = arith.maximumf %13, %14 : vector<32x128xf32>
    %16 = arith.truncf %15 : vector<32x128xf32> to vector<32x128xbf16>
    %c0_12 = arith.constant 0 : index
    %c0_13 = arith.constant 0 : index
    %17 = vector.load %arg6[%c0_12, %c0_13] : memref<128x128xbf16, #tpu.memory_space<vmem>>, vector<128x128xbf16>
    %cst_14 = arith.constant dense<0.000000e+00> : vector<32x128xf32>
    %18 = tpu.matmul %16, %17, %cst_14 {dimension_numbers = #tpu.dot_dimension_numbers<[1], [0], [0], [1], [0, 0, 1, 1], [], []>} : vector<32x128xbf16>, vector<128x128xbf16>, vector<32x128xf32> -> vector<32x128xf32>
    %c0_15 = arith.constant 0 : index
    %c0_16 = arith.constant 0 : index
    %19 = vector.load %arg7[%c0_15, %c0_16] : memref<1x128xf32, #tpu.memory_space<vmem>>, vector<1x128xf32>
    %20 = vector.broadcast %19 : vector<1x128xf32> to vector<32x128xf32>
    %21 = arith.addf %18, %20 : vector<32x128xf32>
    %cst_17 = arith.constant 0.000000e+00 : f32
    %22 = vector.broadcast %cst_17 : f32 to vector<32x128xf32>
    %23 = arith.maximumf %21, %22 : vector<32x128xf32>
    %24 = arith.truncf %23 : vector<32x128xf32> to vector<32x128xbf16>
    %c0_18 = arith.constant 0 : index
    %c0_19 = arith.constant 0 : index
    %25 = vector.load %arg8[%c0_18, %c0_19] : memref<128x8xbf16, #tpu.memory_space<vmem>>, vector<128x8xbf16>
    %cst_20 = arith.constant dense<0.000000e+00> : vector<32x8xf32>
    %26 = tpu.matmul %24, %25, %cst_20 {dimension_numbers = #tpu.dot_dimension_numbers<[1], [0], [0], [1], [0, 0, 1, 1], [], []>} : vector<32x128xbf16>, vector<128x8xbf16>, vector<32x8xf32> -> vector<32x8xf32>
    %c0_21 = arith.constant 0 : index
    %c0_22 = arith.constant 0 : index
    %27 = vector.load %arg9[%c0_21, %c0_22] : memref<1x8xf32, #tpu.memory_space<vmem>>, vector<1x8xf32>
    %28 = vector.broadcast %27 : vector<1x8xf32> to vector<32x8xf32>
    %29 = arith.addf %26, %28 : vector<32x8xf32>
    %c0_23 = arith.constant 0 : index
    %c0_24 = arith.constant 0 : index
    %30 = vector.load %arg10[%c0_23, %c0_24] : memref<32x8xf32, #tpu.memory_space<vmem>>, vector<32x8xf32>
    tpu.vector_store %arg10[%c0_23, %c0_24], %29 {strides = array<i32>} : memref<32x8xf32, #tpu.memory_space<vmem>>, vector<32x8xf32>,
    return
  }
  func.func @transform_0(%arg0: i32) -> (i32, i32) {
    %c0_i32 = arith.constant 0 : i32
    %c0_i32_0 = arith.constant 0 : i32
    return %arg0, %c0_i32 : i32, i32
  }
  func.func @transform_1(%arg0: i32) -> (i32, i32) {
    %c0_i32 = arith.constant 0 : i32
    %c0_i32_0 = arith.constant 0 : i32
    %c0_i32_1 = arith.constant 0 : i32
    return %c0_i32, %c0_i32_0 : i32, i32
  }
  func.func @transform_2(%arg0: i32) -> (i32, i32) {
    %c0_i32 = arith.constant 0 : i32
    %c0_i32_0 = arith.constant 0 : i32
    %c0_i32_1 = arith.constant 0 : i32
    return %c0_i32, %c0_i32_0 : i32, i32
  }
  func.func @transform_3(%arg0: i32) -> (i32, i32) {
    %c0_i32 = arith.constant 0 : i32
    %c0_i32_0 = arith.constant 0 : i32
    %c0_i32_1 = arith.constant 0 : i32
    return %c0_i32, %c0_i32_0 : i32, i32
  }
  func.func @transform_4(%arg0: i32) -> (i32, i32) {
    %c0_i32 = arith.constant 0 : i32
    %c0_i32_0 = arith.constant 0 : i32
    %c0_i32_1 = arith.constant 0 : i32
    return %c0_i32, %c0_i32_0 : i32, i32
  }
  func.func @transform_5(%arg0: i32) -> (i32, i32) {
    %c0_i32 = arith.constant 0 : i32
    %c0_i32_0 = arith.constant 0 : i32
    %c0_i32_1 = arith.constant 0 : i32
    return %c0_i32, %c0_i32_0 : i32, i32
  }
  func.func @transform_6(%arg0: i32) -> (i32, i32) {
    %c0_i32 = arith.constant 0 : i32
    %c0_i32_0 = arith.constant 0 : i32
    %c0_i32_1 = arith.constant 0 : i32
    return %c0_i32, %c0_i32_0 : i32, i32
  }
  func.func @transform_7(%arg0: i32) -> (i32, i32) {
    %c0_i32 = arith.constant 0 : i32
    %c0_i32_0 = arith.constant 0 : i32
    %c0_i32_1 = arith.constant 0 : i32
    return %c0_i32, %c0_i32_0 : i32, i32
  }
  func.func @transform_8(%arg0: i32) -> (i32, i32) {
    %c0_i32 = arith.constant 0 : i32
    %c0_i32_0 = arith.constant 0 : i32
    %c0_i32_1 = arith.constant 0 : i32
    return %c0_i32, %c0_i32_0 : i32, i32
  }
  func.func @transform_9(%arg0: i32) -> (i32, i32) {
    %c0_i32 = arith.constant 0 : i32
    %c0_i32_0 = arith.constant 0 : i32
    return %arg0, %c0_i32 : i32, i32
  }
}

</mosaic_0001>

<bundles_post_ra>
// kernel: ram_dqn_forward.1
= control target key start
LH: loop header
LB: loop body
LE: loop exit
PB: predicated region body
PF: predicated region fallthrough
CT: control target
= control target key end

     0   :  { %14 = vsyncpa [#allocation3], 0  ;;  %s1088_s0 = inlined_call_operand.vmem [shape: bf16[32,128], index: 0, kind: input, shape index: {}]   ;;  %s1089_s1 = inlined_call_operand.hbm [shape: bf16[128,256], index: 1, kind: input, shape index: {}]   ;;  %s1090_s2 = inlined_call_operand.vmem [shape: f32[1,256], index: 2, kind: input, shape index: {}]   ;;  %s1091_s3 = inlined_call_operand.hbm [shape: bf16[256,128], index: 3, kind: input, shape index: {}]   ;;  %s1092_s4 = inlined_call_operand.vmem [shape: f32[1,128], index: 4, kind: input, shape index: {}]   ;;  %s1093_s5 = inlined_call_operand.vmem [shape: bf16[128,128], index: 5, kind: input, shape index: {}]   ;;  %s1094_s6 = inlined_call_operand.vmem [shape: f32[1,128], index: 6, kind: input, shape index: {}]   ;;  %s1095_s7 = inlined_call_operand.vmem [shape: bf16[128,8], index: 7, kind: input, shape index: {}]   ;;  %s1096_s8 = inlined_call_operand.vmem [shape: f32[1,8], index: 8, kind: input, shape index: {}]   ;;  %s1097_s9 = inlined_call_operand.vmem [shape: f32[32,8], index: 9, kind: output, shape index: {}]  }
   0x1   :  { %15 = vsyncpa [#allocation5], 0  ;;  %s947_s30 = smov [#allocation2]  }
   0x2   :  { %s23_s10 = sshll.u32 %s947_s30, 4  ;;  %s24_s10 = int_to_ptr.vmem [resolvable:$true] %s23_s10 }
   0x3   :  { %s911_s11 = scalar_lea.vmem %s24_s10, 2048  ;;  %p916_p1 = scmp.lt.s32.totalorder %s24_s10, %s24_s10 }
   0x4   :  { %p912_p0 = scmp.ne.s32.totalorder %s24_s10, %s911_s11  ;;  %p917_p2 = scmp.lt.s32.totalorder %s911_s11, %s911_s11 }
   0x6   :  { %p918_p3 = por %p917_p2, %p916_p1 }
   0x8   :  { %p919_p4 = pnand %p918_p3, %p912_p0 }
   0xa   :  { %922 = shalt.err (!%p919_p4)
}
   0xb   :  { %s948_s12 = smov 128   ;;  %s949_s13 = smov 8  }
   0xc   :  { %29 = dma.hbm_to_vmem [thread:$0]  %s1089_s1, 2048, %s24_s10, [#allocation3], %s948_s12, %s948_s12, %s949_s13  }
   0xd   :  { %s950_s16 = smov [#allocation4]  }
   0xe   :  { %s37_s17 = sshll.u32 %s950_s16, 4  ;;  %s38_s17 = int_to_ptr.vmem [resolvable:$true] %s37_s17 }
   0xf   :  { %s931_s18 = scalar_lea.vmem %s38_s17, 2048  ;;  %p936_p6 = scmp.lt.s32.totalorder %s38_s17, %s38_s17 }
  0x10   :  { %p932_p5 = scmp.ne.s32.totalorder %s38_s17, %s931_s18  ;;  %p937_p7 = scmp.lt.s32.totalorder %s931_s18, %s931_s18 }
  0x12   :  { %p938_p8 = por %p937_p7, %p936_p6 }
  0x14   :  { %p939_p9 = pnand %p938_p8, %p932_p5 }
  0x16   :  { %942 = shalt.err (!%p939_p9)
}
  0x17   :  { %s951_s19 = smov 64   ;;  %s952_s20 = smov 4  }
  0x18   :  { %43 = dma.hbm_to_vmem [thread:$0]  %s1091_s3, 2048, %s38_s17, [#allocation5], %s951_s19, %s951_s19, %s952_s20  }
  0x19   :  { %943 = dma.done.wait [#allocation3], 2048  }
  0x1a   :  { %944 = vsyncadd [#allocation3], 4294965248 }
  0x1b   :  { %945 = dma.done.wait [#allocation5], 2048  }
  0x1c   :  { %946 = vsyncadd [#allocation5], 4294965248  ;;  %v953_v0 = vmov 0   ;;  %v845_v1 = vld [vmem:[#allocation2 + $0x74] ss:$8 sps:$4 sm:$0xff]   ;;  %v875_v16 = vld [vmem:[#allocation4 + $0x68] sm:$0xff]   ;;  %v83_v38 = vlaneseq }
  0x1d   :  { %217 = vmatprep.mubr.bf16.mxu0 %v953_v0  ;;  %v847_v2 = vld [vmem:[#allocation2 + $0x70] ss:$8 sps:$4 sm:$0xff]   ;;  %185 = vmatprep.subr.bf16.mxu0 %v845_v1  ;;  %v848_v3 = vld [vmem:[#allocation2 + $0x64] ss:$8 sps:$4 sm:$0xff]   ;;  %v850_v4 = vld [vmem:[#allocation2 + $0x60] ss:$8 sps:$4 sm:$0xff]  }
  0x1e   :  { %186 = vmatpush1.bf16.msra.mxu0 %v847_v2  ;;  %v851_v5 = vld [vmem:[#allocation2 + $0x54] ss:$8 sps:$4 sm:$0xff]   ;;  %v853_v6 = vld [vmem:[#allocation2 + $0x50] ss:$8 sps:$4 sm:$0xff]   ;;  %v854_v7 = vld [vmem:[#allocation2 + $0x44] ss:$8 sps:$4 sm:$0xff]  }
  0x1f   :  { %187 = vmatprep.subr.bf16.mxu0 %v848_v3  ;;  %v856_v8 = vld [vmem:[#allocation2 + $0x40] ss:$8 sps:$4 sm:$0xff]   ;;  %v857_v9 = vld [vmem:[#allocation2 + $0x34] ss:$8 sps:$4 sm:$0xff]   ;;  %v859_v10 = vld [vmem:[#allocation2 + $0x30] ss:$8 sps:$4 sm:$0xff]  }
  0x20   :  { %v871_v11 = vld [vmem:[#allocation4 + $0x78] sm:$0xff]   ;;  %v860_v12 = vld [vmem:[#allocation2 + $0x24] ss:$8 sps:$4 sm:$0xff]   ;;  %v873_v14 = vld [vmem:[#allocation4 + $0x70] sm:$0xff]   ;;  %v84_v39 = vshrl.u32 %v83_v38, 7  ;;  %vm686_vm0 = vcmask 64512  }
  0x21   :  { %v872_v13 = vld [vmem:[#allocation4 + $0x38] sm:$0xff]   ;;  %750 = vmatprep.subr.bf16.mxu1 %v871_v11  ;;  %v874_v15 = vld [vmem:[#allocation4 + $0x30] sm:$0xff]   ;;  %v862_v17 = vld [vmem:[#allocation2 + $0x20] ss:$8 sps:$4 sm:$0xff]  }
  0x22   :  { %188 = vmatpush1.bf16.msra.mxu0 %v850_v4  ;;  %751 = vmatpush3.bf16.msra.mxu1 %v872_v13  ;;  %v863_v18 = vld [vmem:[#allocation2 + $0x14] ss:$8 sps:$4 sm:$0xff]   ;;  %v876_v19 = vld [vmem:[#allocation4 + $0x28] sm:$0xff]   ;;  %v865_v20 = vld [vmem:[#allocation2 + $0x10] ss:$8 sps:$4 sm:$0xff]   ;;  %v89_v40 = vsub.s32 1, %v84_v39 }
  0x23   :  { %189 = vmatprep.subr.bf16.mxu0 %v851_v5  ;;  %752 = vmatprep.subr.bf16.mxu1 %v873_v14  ;;  %v877_v21 = vld [vmem:[#allocation4 + $0x60] sm:$0xff]   ;;  %v879_v24 = vld [vmem:[#allocation4 + $0x58] sm:$0xff]   ;;  %v870_v28 = vld [vmem:[%s1088_s0 + $0x8] sm:$0xff]   ;;  %v85_v41 = vsub.s32 0, %v84_v39 }
  0x24   :  { %v866_v22 = vld [vmem:[#allocation2 + $0x4] ss:$8 sps:$4 sm:$0xff]   ;;  %v868_v25 = vld [vmem:[#allocation2] ss:$8 sps:$4 sm:$0xff]   ;;  %v880_v26 = vld [vmem:[#allocation4 + $0x18] sm:$0xff]  }
  0x25   :  { %v878_v23 = vld [vmem:[#allocation4 + $0x20] sm:$0xff]   ;;  %v881_v29 = vld [vmem:[#allocation4 + $0x50] sm:$0xff]   ;;  %v883_v31 = vld [vmem:[#allocation4 + $0x48] sm:$0xff]  }
  0x26   :  { %190 = vmatpush1.bf16.msra.mxu0 %v853_v6  ;;  %753 = vmatpush3.bf16.msra.mxu1 %v874_v15  ;;  %v869_v27 = vld [vmem:[%s1088_s0] sm:$0xff]   ;;  %v882_v30 = vld [vmem:[#allocation4 + $0x10] sm:$0xff]   ;;  %v884_v32 = vld [vmem:[#allocation4 + $0x8] sm:$0xff]  }
  0x27   :  { %191 = vmatprep.subr.bf16.mxu0 %v854_v7  ;;  %754 = vmatprep.subr.bf16.mxu1 %v875_v16  ;;  %v885_v33 = vld [vmem:[#allocation4 + $0x40] sm:$0xff]   ;;  %v887_v35 = vld [vmem:[%s1093_s5 + $0x38] sm:$0xff]   ;;  %v888_v36 = vld [vmem:[%s1093_s5 + $0x30] sm:$0xff]  }
  0x28   :  { %v886_v34 = vld [vmem:[#allocation4] sm:$0xff]   ;;  %v889_v37 = vld [vmem:[%s1093_s5 + $0x28] sm:$0xff]   ;;  %v892_v11 = vld [vmem:[%s1093_s5 + $0x10] sm:$0xff]  }
  0x29   :  { %v81_v42 = vld [vmem:[%s1090_s2] sm:$0x3]  ;;  %v895_v14 = vld [vmem:[%s1095_s7 + $0x38] sm:$0xff]   ;;  %v896_v15 = vld [vmem:[%s1095_s7 + $0x30] sm:$0xff]  }
  0x2a   :  { %192 = vmatpush1.bf16.msra.mxu0 %v856_v8  ;;  %755 = vmatpush3.bf16.msra.mxu1 %v876_v19  ;;  %v90_v44 = vrot.slane %v81_v42, %v89_v40  ;;  %v86_v45 = vrot.slane %v81_v42, %v85_v41  ;;  %v894_v13 = vld [vmem:[%s1093_s5] sm:$0xff]   ;;  %v897_v16 = vld [vmem:[%s1095_s7 + $0x28] sm:$0xff]   ;;  %v900_v42 = vld [vmem:[%s1095_s7 + $0x10] sm:$0xff]  }
  0x2b   :  { %193 = vmatprep.subr.bf16.mxu0 %v857_v9  ;;  %756 = vmatprep.subr.bf16.mxu1 %v877_v21  ;;  %v890_v9 = vld [vmem:[%s1093_s5 + $0x20] sm:$0xff]  }
  0x2e   :  { %194 = vmatpush1.bf16.msra.mxu0 %v859_v10  ;;  %757 = vmatpush3.bf16.msra.mxu1 %v878_v23  ;;  %v891_v10 = vld [vmem:[%s1093_s5 + $0x18] sm:$0xff]  }
  0x2f   :  { %195 = vmatprep.subr.bf16.mxu0 %v860_v12  ;;  %758 = vmatprep.subr.bf16.mxu1 %v879_v24  ;;  %v893_v12 = vld [vmem:[%s1093_s5 + $0x8] sm:$0xff]  }
  0x32   :  { %196 = vmatpush1.bf16.msra.mxu0 %v862_v17  ;;  %759 = vmatpush3.bf16.msra.mxu1 %v880_v26  ;;  %v898_v17 = vld [vmem:[%s1095_s7 + $0x20] sm:$0xff]  }
  0x33   :  { %197 = vmatprep.subr.bf16.mxu0 %v863_v18  ;;  %760 = vmatprep.subr.bf16.mxu1 %v881_v29  ;;  %v899_v18 = vld [vmem:[%s1095_s7 + $0x18] sm:$0xff]  }
  0x36   :  { %198 = vmatpush1.bf16.msra.mxu0 %v865_v20  ;;  %761 = vmatpush3.bf16.msra.mxu1 %v882_v30 }
  0x37   :  { %199 = vmatprep.subr.bf16.mxu0 %v866_v22  ;;  %762 = vmatprep.subr.bf16.mxu1 %v883_v31  ;;  %v715_v22 = vld [vmem:[%s1092_s4] ss:$0 sm:$0xff] }
  0x3a   :  { %200 = vmatpush1.bf16.msra.mxu0 %v868_v25  ;;  %763 = vmatpush3.bf16.msra.mxu1 %v884_v32 }
  0x3b   :  { %764 = vmatprep.subr.bf16.mxu1 %v885_v33  ;;  %798 = vmatprep.subr.bf16.mxu0 %v887_v35 }
  0x3d   :  { %218 = vmatmul.mubr.bf16.vlgmr.msra.gmra.mxu0 %v869_v27 }
  0x3e   :  { %227 = vmatprep.mubr.bf16.mxu0 %v953_v0  ;;  %765 = vmatpush3.bf16.msra.mxu1 %v886_v34 }
  0x3f   :  { %799 = vmatpush3.bf16.msra.mxu0 %v887_v35  ;;  %818 = vmatprep.subr.bf16.mxu1 %v895_v14 }
  0x40   :  { %800 = vmatprep.subr.bf16.mxu0 %v888_v36 }
  0x43   :  { %801 = vmatpush3.bf16.msra.mxu0 %v888_v36 }
  0x44   :  { %802 = vmatprep.subr.bf16.mxu0 %v889_v37 }
  0x45   :  { %228 = vmatmul.mubr.bf16.gmra.mxu0 %v870_v28 }
  0x47   :  { %803 = vmatpush3.bf16.msra.mxu0 %v889_v37 }
  0x48   :  { %804 = vmatprep.subr.bf16.mxu0 %v890_v9 }
  0x4b   :  { %805 = vmatpush3.bf16.msra.mxu0 %v890_v9 }
  0x4c   :  { %806 = vmatprep.subr.bf16.mxu0 %v891_v10 }
  0x4f   :  { %807 = vmatpush3.bf16.msra.mxu0 %v891_v10 }
  0x50   :  { %808 = vmatprep.subr.bf16.mxu0 %v892_v11 }
  0x53   :  { %809 = vmatpush3.bf16.msra.mxu0 %v892_v11 }
  0x54   :  { %810 = vmatprep.subr.bf16.mxu0 %v893_v12 }
  0x57   :  { %811 = vmatpush3.bf16.msra.mxu0 %v893_v12 }
  0x58   :  { %812 = vmatprep.subr.bf16.mxu0 %v894_v13 }
  0x5b   :  { %813 = vmatpush3.bf16.msra.mxu0 %v894_v13 }
  0xfd   :  { %v219_v43 = vpop.f32.mrf.mxu0 }
  0xfe   :  { %v220_v50 = vadd.f32 %v219_v43, %v86_v45  ;;  %v901_v43 = vld [vmem:[%s1095_s7 + $0x8] sm:$0xff]  }
  0xff   :  { %v221_v46 = vpop.f32.mrf.mxu0 }
 0x100   :  { %v222_v48 = vadd.f32 %v221_v46, %v90_v44  ;;  %v238_v57 = vmax.f32 %v220_v50, 0.0 }
 0x101   :  { %v223_v47 = vpop.f32.mrf.mxu0 }
 0x102   :  { %v224_v49 = vadd.f32 %v223_v47, %v86_v45  ;;  %v239_v55 = vmax.f32 %v222_v48, 0.0  ;;  %v732_v47 = vld [vmem:[%s1094_s6] ss:$0 sm:$0xff] }
 0x103   :  { %v225_v51 = vpop.f32.mrf.mxu0 }
 0x104   :  { %v226_v52 = vadd.f32 %v225_v51, %v90_v44  ;;  %v240_v53 = vmax.f32 %v224_v49, 0.0 }
 0x105   :  { %v229_v54 = vpop.f32.mrf.mxu0 }
 0x106   :  { %v241_v56 = vmax.f32 %v226_v52, 0.0  ;;  %v246_v60 = vpack.c.bf16 %v240_v53, %v238_v57  ;;  %v230_v0 = vadd.f32 %v229_v54, %v86_v45 }
 0x107   :  { %v231_v58 = vpop.f32.mrf.mxu0 }
 0x108   :  { %v247_v59 = vpack.c.bf16 %v241_v56, %v239_v55  ;;  %v232_v62 = vadd.f32 %v231_v58, %v90_v44  ;;  %v242_v6 = vmax.f32 %v230_v0, 0.0 }
 0x109   :  { %v233_v61 = vpop.f32.mrf.mxu0 }
 0x10a   :  { %v234_v63 = vadd.f32 %v233_v61, %v86_v45  ;;  %417 = vmatprep.mubr.bf16.mxu1 %v247_v59  ;;  %v243_v4 = vmax.f32 %v232_v62, 0.0 }
 0x10b   :  { %v235_v1 = vpop.f32.mrf.mxu0  ;;  %418 = vmatmul.mubr.bf16.vlgmr.msra.gmra.mxu1 %v246_v60  ;;  %v741_v60 = vld [vmem:[%s1096_s8] ss:$0 sm:$0xff] }
 0x10c   :  { %v236_v2 = vadd.f32 %v235_v1, %v90_v44  ;;  %v244_v3 = vmax.f32 %v234_v63, 0.0  ;;  %819 = vmatpush3.bf16.msra.mxu1 %v895_v14  ;;  %v902_v44 = vld [vmem:[%s1095_s7] sm:$0xff]  }
 0x10d   :  { %820 = vmatprep.subr.bf16.mxu1 %v896_v15 }
 0x10e   :  { %v245_v5 = vmax.f32 %v236_v2, 0.0  ;;  %v248_v8 = vpack.c.bf16 %v244_v3, %v242_v6 }
 0x110   :  { %v249_v7 = vpack.c.bf16 %v245_v5, %v243_v4  ;;  %821 = vmatpush3.bf16.msra.mxu1 %v896_v15 }
 0x111   :  { %822 = vmatprep.subr.bf16.mxu1 %v897_v16 }
 0x112   :  { %425 = vmatprep.mubr.bf16.mxu1 %v249_v7 }
 0x113   :  { %426 = vmatmul.mubr.bf16.gmra.mxu1 %v248_v8 }
 0x114   :  { %823 = vmatpush3.bf16.msra.mxu1 %v897_v16 }
 0x115   :  { %824 = vmatprep.subr.bf16.mxu1 %v898_v17 }
 0x118   :  { %825 = vmatpush3.bf16.msra.mxu1 %v898_v17 }
 0x119   :  { %826 = vmatprep.subr.bf16.mxu1 %v899_v18 }
 0x11c   :  { %827 = vmatpush3.bf16.msra.mxu1 %v899_v18 }
 0x11d   :  { %828 = vmatprep.subr.bf16.mxu1 %v900_v42 }
 0x120   :  { %829 = vmatpush3.bf16.msra.mxu1 %v900_v42 }
 0x121   :  { %830 = vmatprep.subr.bf16.mxu1 %v901_v43 }
 0x124   :  { %831 = vmatpush3.bf16.msra.mxu1 %v901_v43 }
 0x125   :  { %832 = vmatprep.subr.bf16.mxu1 %v902_v44 }
 0x128   :  { %833 = vmatpush3.bf16.msra.mxu1 %v902_v44 }
 0x1cb   :  { %v766_v19 = vpop.f32.mrf.mxu1 }
 0x1cd   :  { %v767_v20 = vpop.f32.mrf.mxu1 }
 0x1ce   :  { %v768_v21 = vadd.f32 %v767_v20, %v766_v19 }
 0x1cf   :  { %v769_v23 = vpop.f32.mrf.mxu1 }
 0x1d0   :  { %v420_v25 = vadd.f32 %v768_v21, %v715_v22 }
 0x1d1   :  { %v770_v24 = vpop.f32.mrf.mxu1 }
 0x1d2   :  { %v771_v26 = vadd.f32 %v770_v24, %v769_v23  ;;  %v434_v30 = vmax.f32 %v420_v25, 0.0 }
 0x1d3   :  { %v772_v27 = vpop.f32.mrf.mxu1 }
 0x1d4   :  { %v423_v28 = vadd.f32 %v771_v26, %v715_v22 }
 0x1d5   :  { %v773_v29 = vpop.f32.mrf.mxu1 }
 0x1d6   :  { %v435_v31 = vmax.f32 %v423_v28, 0.0  ;;  %v774_v32 = vadd.f32 %v773_v29, %v772_v27 }
 0x1d7   :  { %v775_v33 = vpop.f32.mrf.mxu1 }
 0x1d8   :  { %v438_v34 = vpack.c.bf16 %v435_v31, %v434_v30  ;;  %v428_v36 = vadd.f32 %v774_v32, %v715_v22 }
 0x1d9   :  { %v776_v35 = vpop.f32.mrf.mxu1 }
 0x1da   :  { %v777_v37 = vadd.f32 %v776_v35, %v775_v33  ;;  %814 = vmatprep.mubr.bf16.mxu0 %v438_v34  ;;  %v436_v39 = vmax.f32 %v428_v36, 0.0 }
 0x1dc   :  { %v431_v38 = vadd.f32 %v777_v37, %v715_v22 }
 0x1de   :  { %v437_v40 = vmax.f32 %v431_v38, 0.0 }
 0x1e0   :  { %v439_v41 = vpack.c.bf16 %v437_v40, %v436_v39 }
 0x1e2   :  { %815 = vmatmul.mubr.bf16.vlgmr.msra.gmra.mxu0 %v439_v41 }
 0x2a2   :  { %v816_v45 = vpop.f32.mrf.mxu0 }
 0x2a3   :  { %v554_v51 = vadd.f32 %v816_v45, %v732_v47 }
 0x2a4   :  { %v545_v46 = vpop.f32.mrf.mxu0 }
 0x2a5   :  { %v546_v49 = vadd.f32 %v732_v47, %v545_v46  ;;  %v562_v57 = vmax.f32 %v554_v51, 0.0 }
 0x2a6   :  { %v817_v48 = vpop.f32.mrf.mxu0 }
 0x2a7   :  { %v557_v50 = vadd.f32 %v817_v48, %v732_v47  ;;  %v560_v55 = vmax.f32 %v546_v49, 0.0 }
 0x2a8   :  { %v548_v52 = vpop.f32.mrf.mxu0 }
 0x2a9   :  { %v549_v53 = vadd.f32 %v732_v47, %v548_v52  ;;  %v563_v54 = vmax.f32 %v557_v50, 0.0 }
 0x2ab   :  { %v561_v56 = vmax.f32 %v549_v53, 0.0  ;;  %v565_v59 = vpack.c.bf16 %v563_v54, %v562_v57 }
 0x2ad   :  { %v564_v58 = vpack.c.bf16 %v561_v56, %v560_v55 }
 0x2af   :  { %834 = vmatprep.mubr.bf16.mxu1 %v564_v58 }
 0x2b0   :  { %835 = vmatmul.mubr.bf16.vlgmr.msra.gmra.mxu1 %v565_v59 }
 0x370   :  { %v836_v61 = vpop.f32.mrf.mxu1 }
 0x371   :  { %v680_v62 = vadd.f32 %v836_v61, %v741_v60 }
 0x372   :  { %v671_v63 = vpop.f32.mrf.mxu1 }
 0x373   :  { %689 = vst.msk [vmem:[%s1097_s9 + $0x10] sm:$0xff] %vm686_vm0, %v680_v62  ;;  %v672_v0 = vadd.f32 %v741_v60, %v671_v63 }
 0x374   :  { %v837_v1 = vpop.f32.mrf.mxu1 }
 0x375   :  { %687 = vst.msk [vmem:[%s1097_s9] sm:$0xff] %vm686_vm0, %v672_v0  ;;  %v683_v2 = vadd.f32 %v837_v1, %v741_v60 }
 0x376   :  { %v674_v3 = vpop.f32.mrf.mxu1 }
 0x377   :  { %690 = vst.msk [vmem:[%s1097_s9 + $0x18] sm:$0xff] %vm686_vm0, %v683_v2  ;;  %v675_v4 = vadd.f32 %v741_v60, %v674_v3 }
 0x379   :  { %688 = vst.msk [vmem:[%s1097_s9 + $0x8] sm:$0xff] %vm686_vm0, %v675_v4 }
 0x37a   :  { %695 = vsyncpa [#allocation3], 1 }
 0x37b   :  { %696 = vsyncpa [#allocation5], 1 }

</bundles_post_ra>
